<compile_context>
chip_gen: v7x
topology: tpu7x:2x2x1
jax: 0.10.0
libtpu: 0.0.40
codegen_flags: <defaults>
</compile_context>

<pallas_src>
import math

import jax
import jax.numpy as jnp
from jax.experimental import pallas as pl
from jax.experimental.pallas import tpu as pltpu


def _dense_graph_conv_kernel(adj_ref, x_ref, wcat_ref, lb_ref, o_ref):
    # Per-grid-step views (grid = (batch b, node-row tile j)):
    #   adj_ref : (1, TN, Np)   rows of A for this tile, all columns (bf16/f32)
    #   x_ref   : (1, Np, Fin)  full node features for this batch element
    #   wcat_ref: (2*Fin, Fp)   [W ; lin_W^T], Fout padded to lane-dense Fp
    #   lb_ref  : (1, Fp)       padded Linear bias
    #   o_ref   : (1, TN, Fp)
    tn = o_ref.shape[1]

    adj = adj_ref[0].astype(jnp.float32)        # bf16 0/1 -> f32 is exact
    x_all = x_ref[0].astype(jnp.float32)        # (Np, Fin)

    # Rows of x belonging to this tile (for the root/self Linear term).
    row0 = pl.multiple_of(pl.program_id(1) * tn, tn)
    x_tile = x_ref[0, pl.ds(row0, tn), :].astype(jnp.float32)   # (TN, Fin)

    # Neighborhood aggregation on the MXU, f32 accumulation.
    agg = jnp.dot(adj, x_all, preferred_element_type=jnp.float32)  # (TN, Fin)

    # aggr == 'mean': scale by 1/deg (clamped to 1); reciprocal goes to EUP.
    deg = jnp.maximum(jnp.sum(adj, axis=-1, keepdims=True), 1.0)   # (TN, 1)
    agg = agg * pl.reciprocal(deg, approx=True)

    # Single fused matmul:  [agg/deg | x] @ [W ; lin_W^T]  + bias.
    feat = jnp.concatenate([agg, x_tile], axis=-1)                 # (TN, 2*Fin)
    out = jnp.dot(feat, wcat_ref[...], preferred_element_type=jnp.float32)
    out = out + lb_ref[...]

    o_ref[0] = out.astype(o_ref.dtype)


def dense_graph_conv(x, adj, weight, lin_weight, lin_bias):
    """x: (B,N,Fin), adj: (B,N,N) (f32 or bf16 0/1), weight: (Fin,Fout),
    lin_weight: (Fout,Fin) (PyTorch Linear layout), lin_bias: (Fout,)."""
    if x.ndim == 2:
        x = x[None]
    if adj.ndim == 2:
        adj = adj[None]
    B, N, Fin = x.shape
    Fout = weight.shape[1]

    # --- tiling over the node dimension -------------------------------------
    if N <= 128:
        TN = -(-N // 8) * 8            # round small N up to the sublane (8)
        N_pad = TN
    else:
        TN = 128
        N_pad = -(-N // TN) * TN
    Fout_pad = -(-Fout // 128) * 128   # lane-dense output last dim

    x_p = x.astype(jnp.float32)
    adj_p = adj
    if N_pad != N:
        x_p = jnp.pad(x_p, ((0, 0), (0, N_pad - N), (0, 0)))
        adj_p = jnp.pad(adj_p, ((0, 0), (0, N_pad - N), (0, N_pad - N)))

    # Fused weight [W ; lin_W^T] -> (2*Fin, Fout_pad); bias -> (1, Fout_pad).
    wcat = jnp.concatenate(
        [weight.astype(jnp.float32), lin_weight.T.astype(jnp.float32)], axis=0)
    lb = lin_bias.astype(jnp.float32)
    if Fout_pad != Fout:
        wcat = jnp.pad(wcat, ((0, 0), (0, Fout_pad - Fout)))
        lb = jnp.pad(lb, (0, Fout_pad - Fout))
    lb = lb.reshape(1, Fout_pad)

    grid = (B, N_pad // TN)

    out = pl.pallas_call(
        _dense_graph_conv_kernel,
        out_shape=jax.ShapeDtypeStruct((B, N_pad, Fout_pad), x.dtype),
        grid_spec=pltpu.PrefetchScalarGridSpec(
            num_scalar_prefetch=0,
            grid=grid,
            in_specs=[
                # adjacency row-tile: (1, TN, N_pad)
                pl.BlockSpec((1, TN, N_pad), lambda b, j: (b, j, 0)),
                # full node features (re-used across row tiles of a batch)
                pl.BlockSpec((1, N_pad, Fin), lambda b, j: (b, 0, 0)),
                # fused weights / bias: constant-index -> resident in VMEM
                pl.BlockSpec((2 * Fin, Fout_pad), lambda b, j: (0, 0)),
                pl.BlockSpec((1, Fout_pad), lambda b, j: (0, 0)),
            ],
            out_specs=pl.BlockSpec((1, TN, Fout_pad), lambda b, j: (b, j, 0)),
        ),
        compiler_params=pltpu.CompilerParams(
            dimension_semantics=("parallel", "parallel"),
            vmem_limit_bytes=32 * 1024 * 1024,
        ),
    )(adj_p, x_p, wcat, lb)

    return out[:, :N, :Fout]


def _reference(x, adj, weight, lin_weight, lin_bias):
    out = jnp.matmul(adj, x)
    out = jnp.matmul(out, weight)
    deg = jnp.maximum(jnp.sum(adj, axis=-1, keepdims=True), 1.0)
    out = out / deg
    out = out + (jnp.matmul(x, lin_weight.T) + lin_bias)
    return out


if __name__ == "__main__":
    B, N, Fin, Fout = 2, 16, 8, 16

    key = jax.random.PRNGKey(0)
    kx, kadj, kw, klw, klb = jax.random.split(key, 5)

    # Node features and a random symmetric 0/1 adjacency.
    x = jax.random.normal(kx, (B, N, Fin), dtype=jnp.float32)
    a = (jax.random.uniform(kadj, (B, N, N)) > 0.5).astype(jnp.float32)
    adj = jnp.maximum(a, jnp.swapaxes(a, -1, -2))

    # Deterministic parameter init mirroring the module's reset_parameters.
    bound_w = 1.0 / math.sqrt(Fin)
    weight = jax.random.uniform(kw, (Fin, Fout), minval=-bound_w,
                                maxval=bound_w, dtype=jnp.float32)
    lin_weight = jax.random.uniform(klw, (Fout, Fin), minval=-bound_w,
                                    maxval=bound_w, dtype=jnp.float32)
    lin_bias = jax.random.uniform(klb, (Fout,), minval=-bound_w,
                                  maxval=bound_w, dtype=jnp.float32)

    # adj values are 0/1 -> bf16 representation is exact; halves adj HBM bytes.
    adj_bf16 = adj.astype(jnp.bfloat16)

    out = dense_graph_conv(x, adj_bf16, weight, lin_weight, lin_bias)
    out = jax.block_until_ready(out)

    ref = _reference(x, adj, weight, lin_weight, lin_bias)
    assert out.shape == (B, N, Fout)
    # Tolerance accounts for the approximate (EUP) reciprocal used for 1/deg.
    assert jnp.allclose(out, ref, atol=1e-2, rtol=1e-2), "mismatch vs reference"

    print("KERNEL_OK")
</pallas_src>

<mosaic_0001>
module attributes {stable_mosaic.version = 11 : i64} {
  func.func @_dense_graph_conv_kernel(%arg0: i32, %arg1: i32, %arg2: memref<1x16x16xbf16, #tpu.memory_space<vmem>>, %arg3: memref<1x16x8xf32, #tpu.memory_space<vmem>>, %arg4: memref<16x128xf32, #tpu.memory_space<vmem>>, %arg5: memref<1x128xf32, #tpu.memory_space<vmem>>, %arg6: memref<1x16x128xf32, #tpu.memory_space<vmem>>) attributes {dimension_semantics = [#tpu.dimension_semantics<parallel>, #tpu.dimension_semantics<parallel>], iteration_bounds = array<i64: 2, 1>, scalar_prefetch = 0 : i64, scratch_operands = 0 : i64, tpu.core_type = #tpu.core_type<tc>, window_params = [{transform_indices = @transform_0, window_bounds = array<i64: 1, 16, 16>}, {transform_indices = @transform_1, window_bounds = array<i64: 1, 16, 8>}, {pipeline_mode = #tpu.pipeline_mode<synchronous>, transform_indices = @transform_2, window_bounds = array<i64: 16, 128>}, {pipeline_mode = #tpu.pipeline_mode<synchronous>, transform_indices = @transform_3, window_bounds = array<i64: 1, 128>}, {transform_indices = @transform_4, window_bounds = array<i64: 1, 16, 128>}]} {
    %c0 = arith.constant 0 : index
    %c0_0 = arith.constant 0 : index
    %c0_1 = arith.constant 0 : index
    %0 = vector.load %arg2[%c0, %c0_0, %c0_1] : memref<1x16x16xbf16, #tpu.memory_space<vmem>>, vector<1x16x16xbf16>
    %1 = vector.shape_cast %0 : vector<1x16x16xbf16> to vector<16x16xbf16>
    %2 = arith.extf %1 : vector<16x16xbf16> to vector<16x16xf32>
    %c0_2 = arith.constant 0 : index
    %c0_3 = arith.constant 0 : index
    %c0_4 = arith.constant 0 : index
    %3 = vector.load %arg3[%c0_2, %c0_3, %c0_4] : memref<1x16x8xf32, #tpu.memory_space<vmem>>, vector<1x16x8xf32>
    %4 = vector.shape_cast %3 : vector<1x16x8xf32> to vector<16x8xf32>
    %c16_i32 = arith.constant 16 : i32
    %5 = arith.muli %arg1, %c16_i32 : i32
    %6 = tpu.assume_multiple %5, 16 : i32
    %c0_5 = arith.constant 0 : index
    %7 = arith.index_cast %6 : i32 to index
    %c0_6 = arith.constant 0 : index
    %8 = vector.load %arg3[%c0_5, %7, %c0_6] : memref<1x16x8xf32, #tpu.memory_space<vmem>>, vector<1x16x8xf32>
    %9 = vector.shape_cast %8 : vector<1x16x8xf32> to vector<16x8xf32>
    %cst = arith.constant dense<0.000000e+00> : vector<16x8xf32>
    %10 = tpu.matmul %2, %4, %cst {dimension_numbers = #tpu.dot_dimension_numbers<[1], [0], [0], [1], [0, 0, 1, 1], [], []>} : vector<16x16xf32>, vector<16x8xf32>, vector<16x8xf32> -> vector<16x8xf32>
    %cst_7 = arith.constant dense<0.000000e+00> : vector<16xf32>
    %11 = vector.multi_reduction <add>, %2, %cst_7 [1] : vector<16x16xf32> to vector<16xf32>
    %12 = vector.shape_cast %11 : vector<16xf32> to vector<16x1xf32>
    %cst_8 = arith.constant 1.000000e+00 : f32
    %13 = vector.broadcast %cst_8 : f32 to vector<16x1xf32>
    %14 = arith.maximumf %12, %13 : vector<16x1xf32>
    %15 = tpu.reciprocal %14 {approx = true} : vector<16x1xf32> -> vector<16x1xf32>
    %16 = vector.broadcast %15 : vector<16x1xf32> to vector<16x8xf32>
    %17 = arith.mulf %10, %16 : vector<16x8xf32>
    %18 = tpu.concatenate %17, %9 in 1 : vector<16x8xf32>, vector<16x8xf32> -> vector<16x16xf32>
    %c0_9 = arith.constant 0 : index
    %c0_10 = arith.constant 0 : index
    %19 = vector.load %arg4[%c0_9, %c0_10] : memref<16x128xf32, #tpu.memory_space<vmem>>, vector<16x128xf32>
    %cst_11 = arith.constant dense<0.000000e+00> : vector<16x128xf32>
    %20 = tpu.matmul %18, %19, %cst_11 {dimension_numbers = #tpu.dot_dimension_numbers<[1], [0], [0], [1], [0, 0, 1, 1], [], []>} : vector<16x16xf32>, vector<16x128xf32>, vector<16x128xf32> -> vector<16x128xf32>
    %c0_12 = arith.constant 0 : index
    %c0_13 = arith.constant 0 : index
    %21 = vector.load %arg5[%c0_12, %c0_13] : memref<1x128xf32, #tpu.memory_space<vmem>>, vector<1x128xf32>
    %22 = vector.broadcast %21 : vector<1x128xf32> to vector<16x128xf32>
    %23 = arith.addf %20, %22 : vector<16x128xf32>
    %c0_14 = arith.constant 0 : index
    %c0_15 = arith.constant 0 : index
    %c0_16 = arith.constant 0 : index
    %24 = vector.load %arg6[%c0_14, %c0_15, %c0_16] : memref<1x16x128xf32, #tpu.memory_space<vmem>>, vector<1x16x128xf32>
    %25 = vector.shape_cast %24 : vector<1x16x128xf32> to vector<16x128xf32>
    %26 = vector.shape_cast %23 : vector<16x128xf32> to vector<1x16x128xf32>
    tpu.vector_store %arg6[%c0_14, %c0_15, %c0_16], %26 {strides = array<i32>} : memref<1x16x128xf32, #tpu.memory_space<vmem>>, vector<1x16x128xf32>,
    return
  }
  func.func @transform_0(%arg0: i32, %arg1: i32) -> (i32, i32, i32) {
    %c0_i32 = arith.constant 0 : i32
    %c0_i32_0 = arith.constant 0 : i32
    return %arg0, %arg1, %c0_i32 : i32, i32, i32
  }
  func.func @transform_1(%arg0: i32, %arg1: i32) -> (i32, i32, i32) {
    %c0_i32 = arith.constant 0 : i32
    %c0_i32_0 = arith.constant 0 : i32
    %c0_i32_1 = arith.constant 0 : i32
    return %arg0, %c0_i32, %c0_i32_0 : i32, i32, i32
  }
  func.func @transform_2(%arg0: i32, %arg1: i32) -> (i32, i32) {
    %c0_i32 = arith.constant 0 : i32
    %c0_i32_0 = arith.constant 0 : i32
    %c0_i32_1 = arith.constant 0 : i32
    return %c0_i32, %c0_i32_0 : i32, i32
  }
  func.func @transform_3(%arg0: i32, %arg1: i32) -> (i32, i32) {
    %c0_i32 = arith.constant 0 : i32
    %c0_i32_0 = arith.constant 0 : i32
    %c0_i32_1 = arith.constant 0 : i32
    return %c0_i32, %c0_i32_0 : i32, i32
  }
  func.func @transform_4(%arg0: i32, %arg1: i32) -> (i32, i32, i32) {
    %c0_i32 = arith.constant 0 : i32
    %c0_i32_0 = arith.constant 0 : i32
    return %arg0, %arg1, %c0_i32 : i32, i32, i32
  }
}

</mosaic_0001>

<bundles_post_ra>
// kernel: tpu_custom_call.1
= control target key start
LH: loop header
LB: loop body
LE: loop exit
PB: predicated region body
PF: predicated region fallthrough
CT: control target
= control target key end

     0   :  { %9 = vsyncpa [#allocation3], 0  ;;  %s925_s0 = inlined_call_operand.vmem [shape: bf16[2,16,16], index: 0, kind: input, shape index: {}]   ;;  %s926_s1 = inlined_call_operand.vmem [shape: f32[2,16,8], index: 1, kind: input, shape index: {}]   ;;  %s927_s2 = inlined_call_operand.vmem [shape: f32[16,128], index: 2, kind: input, shape index: {}]   ;;  %s928_s3 = inlined_call_operand.vmem [shape: f32[1,128], index: 3, kind: input, shape index: {}]   ;;  %s929_s4 = inlined_call_operand.hbm [shape: f32[2,16,128], index: 4, kind: output, shape index: {}]  }
   0x1   :  { %11 = vsyncpa [#allocation3 + $0x1], 0  ;;  %s789_s15 = smov 0   ;;  %s791_s16 = smov 0  }
   0x2   :  { %s793_s17 = smov 0   ;;  %s795_s18 = smov 0  }
   0x3   :  { %s797_s19 = smov 0   ;;  %s799_s20 = smov 0  }
   0x4 LB: > { %s563_s21 = sadd.s32 4294967295, %s759_s20   ;;  %s564_s22 = sadd.s32 4294967294, %s759_s20   ;;  %s759_s20 = sphi %s799_s20, %s17_s20   ;;  %s755_s19 = sphi %s797_s19, %s936_s19   ;;  %s751_s18 = sphi %s795_s18, %s935_s18   ;;  %s747_s17 = sphi %s793_s17, %s934_s17   ;;  %s743_s16 = sphi %s791_s16, %s933_s16   ;;  %s739_s15 = sphi %s789_s15, %s932_s15  }
   0x5   : > { %s29_s23 = sadd.s32 1, %s755_s19  ;;  %s134_s24 = sadd.s32 1, %s747_s17 }
   0x6   : > { %p31_p0 = scmp.ge.s32.totalorder %s29_s23, 2  ;;  %p144_p1 = scmp.ne.s32.totalorder %s747_s17, %s743_s16 }
   0x7   : > { %p145_p2 = scmp.eq.s32.totalorder %s563_s21, 1  ;;  %p150_p3 = scmp.ne.s32.totalorder %s743_s16, %s739_s15 }
   0x8   : > { %s938_s23 = smov (%p31_p0, %s29_s23), 0  ;;  %p151_p5 = scmp.eq.s32.totalorder %s564_s22, 1 }
   0x9   : > { %p829_p4 = por %p145_p2, %p144_p1  ;;  %s129_s26 = ssub.s32 %s755_s19, %s938_s23 }
   0xa   : > { %p567_p6 = scmp.ge.s32.totalorder %s759_s20, 1  ;;  %p132_p7 = scmp.eq.s32.totalorder %s129_s26, 0 }
   0xb   : > { %p836_p8 = por %p151_p5, %p150_p3  ;;  %p196_p9 = scmp.lt.s32.totalorder %s759_s20, 3 }
   0xc   : > { %s842_s28 = scalar_select %p132_p7, %s747_s17, %s134_s24  }
   0xd   : > { %p197_p10 = pnand %p567_p6, %p196_p9 }
   0xe   : > { %p232_p11 = scmp.lt.s32.totalorder (!%p197_p10), %s751_s18, 1  ;;  %vm257_vm0 = vcmask (!%p197_p10), 130048   ;;  %s761_s12 = smov (!%p197_p10), 8   ;;  %v362_v8 = vld [vmem:[%s927_s2] sm:$0xff] (!%p197_p10)  ;;  %v363_v9 = vld [vmem:[%s927_s2 + $0x8] sm:$0xff] (!%p197_p10)  ;;  %vm359_vm1 = vcmask (!%p197_p10), 64512  }
   0xf   : > { %200 = sbr.rel (%p197_p10) target bundleno = 480 (0x1e0), region = 36  ;;  %v616_v10 = vpack.c.bf16 (!%p197_p10), %v363_v9, %v362_v8  ;;  %s228_s24 = sand.u32 (!%p197_p10), 1, %s743_s16   ;;  %v575_v25 = vld [vmem:[%s928_s3] ss:$0 sm:$0xff] (!%p197_p10) }
  0x10   : > { %s568_s26 = sshll.u32 (!%p197_p10), %s228_s24, 4  ;;  %s585_s7 = sshll.u32 (!%p197_p10), %s751_s18, 8 }
  0x11   : > { %617 = vmatprep.subr.bf16.mxu1 (!%p197_p10), %v616_v10  ;;  %s876_s10 = scalar_lea.hbm (!%p197_p10), %s929_s4, %s585_s7 }
  0x12   : > { %619 = vmatpush3.bf16.msra.mxu1 (!%p197_p10), %v616_v10 }
  0x16   : > { %s233_s29 = scalar_select %p232_p11, %s751_s18, 1 }
  0x17   : > { %s762_s18 = smov [#allocation2]  }
  0x18   : > { %s584_s30 = sshll.u32 %s233_s29, 4  ;;  %s583_s5 = sshll.u32 %s233_s29, 3 }
  0x19   : > { %s245_s8 = scalar_lea.vmem %s926_s1, %s584_s30  ;;  %s239_s11 = scalar_lea.vmem %s925_s0, %s583_s5 }
  0x1a   : > { %v251_v0 = vld [vmem:[%s245_s8] sm:$0xff]  ;;  %v252_v1 = vld [vmem:[%s245_s8 + $0x8] sm:$0xff]  ;;  %s230_s5 = scalar_lea.vmem [#allocation2], %s568_s26  ;;  %s685_s14 = sshll.u32 %s762_s18, 4  ;;  %s686_s14 = int_to_ptr.vmem [resolvable:$false] %s685_s14 }
  0x1b   : > { %v587_v2 = vld [vmem:[%s239_s11] sm:$0xff]   ;;  %v612_v3 = vpack.c.bf16 %v252_v1, %v251_v0  ;;  %353 = vrot.lane.b32.xlu1 %v251_v0, %s761_s12  ;;  %s470_s6 = sshll.u32 %s230_s5, 4  ;;  %s878_s11 = scalar_lea.sflag [#allocation3], %s228_s24  ;;  %s871_s6 = int_to_ptr.vmem [resolvable:$true] %s470_s6 }
  0x1c   : > { %v588_v4 = vunpack.c.l.bf16 %v587_v2  ;;  %v589_v5 = vunpack.c.h.bf16 %v587_v2  ;;  %s681_s13 = scalar_lea.vmem %s871_s6, 256  ;;  %s687_s21 = scalar_lea.vmem %s686_s14, 512 }
  0x1d   : > { %613 = vmatprep.subr.bf16.mxu0 %v612_v3  ;;  %p682_p12 = scmp.ne.s32.totalorder %s871_s6, %s681_s13  ;;  %p688_p1 = scmp.lt.s32.totalorder %s871_s6, %s686_s14 }
  0x1e   : > { %602 = vmatprep.mubr.msk.f32.mxu0 %vm257_vm0, %v588_v4  ;;  %v339_v6 = vsel %vm257_vm0, %v588_v4, 0.0  ;;  %615 = vmatpush3.bf16.msra.mxu0 %v612_v3  ;;  %v342_v7 = vsel %vm257_vm0, %v589_v5, 0.0  ;;  %p689_p2 = scmp.lt.s32.totalorder %s687_s21, %s681_s13 }
  0x1f   : > { %340 = vadd.xlane.f32.xlu0 %v339_v6  ;;  %355 = vrot.lane.b32.xlu1 %v252_v1, %s761_s12  ;;  %p683_p13 = pnand %p682_p12, %p829_p4 }
  0x20   : > { %p690_p3 = por %p689_p2, %p688_p1 }
  0x21   : > { %603 = vmatmul.mubr.msk.f32.vlgmr.msra.gmra.mrb[0].mxu0 %vm257_vm0, %v589_v5  ;;  %p684_p0 = pneg %p683_p13 }
  0x23   : > { %343 = vadd.xlane.f32.xlu0 %v342_v7  ;;  %p691_p5 = pnand %p690_p3, %p684_p0 }
  0x8d   : > { %v354_v15 = vpop.permute.xlu1 %353 }
  0x91   : > { %v356_v22 = vpop.permute.xlu1 %355 }
  0xac   : > { %v341_v11 = vpop.xlane.xlu0 %340 }
  0xad   : > { %v345_v14 = vmax.f32 %v341_v11, 1.0 }
  0xb0   : > { %v344_v12 = vpop.xlane.xlu0 %343 }
  0xb1   : > { %v346_v13 = vmax.f32 %v344_v12, 1.0 }
  0xb3   : > { %677 = vrcp.f32 %v346_v13 }
  0xb4   : > { %679 = vrcp.f32 %v345_v14 }
  0xbd   : > { %v678_v16 = vpop.eup %677 }
  0xbe   : > { %v680_v18 = vpop.eup %679 }
  0xf4   : > { %v604_v17 = vpop.f32.mrb[0].mxu0 }
  0xf5   : > { %v350_v19 = vmul.f32 %v678_v16, %v604_v17  ;;  %v330_v20 = vpop.f32.mrb[1].mxu0 }
  0xf6   : > { %v349_v21 = vmul.f32 %v680_v18, %v330_v20 }
  0xf7   : > { %v361_v24 = vsel %vm359_vm1, %v350_v19, %v356_v22 }
  0xf8   : > { %v360_v23 = vsel %vm359_vm1, %v349_v21, %v354_v15 }
  0xf9   : > { %609 = vmatprep.mubr.msk.f32.mxu1 %vm257_vm0, %v360_v23 }
  0xfa   : > { %610 = vmatmul.mubr.msk.f32.vlgmr.msra.gmra.mrb[0].mxu1 %vm257_vm0, %v361_v24 }
 0x1cd   : > { %v611_v26 = vpop.f32.mrb[0].mxu1 }
 0x1ce   : > { %v449_v27 = vadd.f32 %v611_v26, %v575_v25  ;;  %v443_v28 = vpop.f32.mrb[1].mxu1 }
 0x1cf   : > { %v444_v29 = vadd.f32 %v575_v25, %v443_v28 }
 0x1d0   : > { %453 = vst [vmem:[%s230_s5 + $0x8] sm:$0xff] %v449_v27 }
 0x1d1   : > { %452 = vst [vmem:[%s230_s5] sm:$0xff] %v444_v29 }
 0x1d2   : > { %694 = shalt.err (!%p691_p5)
}
 0x1d3   : > { %s695_s22 = scalar_lea.hbm %s876_s10, 256  ;;  %s699_s29 = scalar_lea.hbm %s929_s4, 512 }
 0x1d4   : > { %p696_p6 = scmp.ne.s32.totalorder %s876_s10, %s695_s22  ;;  %p700_p10 = scmp.lt.u32.totalorder %s876_s10, %s929_s4 }
 0x1d5   : > { %p701_p11 = scmp.lt.u32.totalorder %s699_s29, %s695_s22  ;;  %p703_p13 = scmp.lt.u32.totalorder %s695_s22, %s876_s10 }
 0x1d6   : > { %p697_p7 = pnand %p696_p6, %p829_p4 }
 0x1d7   : > { %p702_p12 = por %p701_p11, %p700_p10 }
 0x1d8   : > { %p698_p9 = pneg %p697_p7 }
 0x1d9   : > { %p704_p0 = por %p703_p13, %p702_p12 }
 0x1db   : > { %p705_p1 = pnand %p704_p0, %p698_p9 }
 0x1dd   : > { %708 = shalt.err (!%p705_p1)
}
 0x1de   : > { %s763_s7 = smov 128  }
 0x1df   : > { %620 = dma.vmem_to_hbm [thread:$0]  (%p829_p4), %s871_s6, 256, %s876_s10, %s878_s11, %s763_s7, %s763_s7, %s761_s12  }
 0x1e0 PF: > { %p626_p2 = scmp.ge.s32.totalorder %s759_s20, 2  ;;  %s485_s8 = sand.u32 1, %s739_s15  }
 0x1e1   : > { %s486_s9 = scalar_lea.sflag [#allocation3], %s485_s8 }
 0x1e2   : > { %p623_p3 = pnand %p626_p2, %p836_p8 }
 0x1e4   : > { %734 = dma.done.wait (!%p623_p3), %s486_s9, 256  }
 0x1e5   : > { %736 = vsyncadd (!%p623_p3), %s486_s9, 4294967040  ;;  %s17_s20 = sadd.s32 1, %s759_s20   ;;  %s932_s15 = smov %s743_s16 }
 0x1e6   : > { %p14_p5 = scmp.ge.s32.totalorder %s17_s20, 4   ;;  %s933_s16 = smov %s747_s17 }
 0x1e7   : > { %s934_s17 = smov %s842_s28  ;;  %s935_s18 = smov %s755_s19 }
 0x1e8   : > { %s936_s19 = smov %s938_s23  ;;  %16 = sbr.rel (!%p14_p5) target bundleno = 4 (0x4), region = 75 }
 0x1ef   :  { %491 = vsyncpa [#allocation3], 1 }
 0x1f0   :  { %493 = vsyncpa [#allocation3 + $0x1], 1 }

</bundles_post_ra>
